<compile_context>
chip_gen: v7x
topology: tpu7x:2x2x1
jax: 0.10.0
libtpu: 0.0.40
codegen_flags: <defaults>
</compile_context>

<pallas_src>
import functools

import jax
import jax.numpy as jnp
from jax.experimental import pallas as pl
from jax.experimental.pallas import tpu as pltpu


def _cdiv(a, b):
    return -(-a // b)


def _round_up(x, m):
    return _cdiv(x, m) * m


def _kl_kernel(s_ref, t_ref, lbl_ref, out_ref, hard_acc, kl_acc, *,
               inv_temp, temp_sq, alpha, beta, total_rows, block_b, nb_inner):
    split = pl.program_id(0)
    i = pl.program_id(1)

    @pl.when(i == 0)
    def _init():
        hard_acc[...] = jnp.zeros_like(hard_acc)
        kl_acc[...] = jnp.zeros_like(kl_acc)

    s = s_ref[...].astype(jnp.float32)            # (TB, C)
    t = t_ref[...].astype(jnp.float32)            # (TB, C)
    lbl = lbl_ref[...]                            # (TB, 1) int32
    tb, c = s.shape

    # Mask rows that fall in the zero-padded tail of the batch.
    row0 = (split * nb_inner + i) * block_b
    rows = row0 + jax.lax.broadcasted_iota(jnp.int32, (tb, 1), 0)
    valid = (rows < total_rows).astype(jnp.float32)           # (TB, 1)

    # ---- hard loss: cross-entropy(student, labels), summed over this tile ----
    m_s = jnp.max(s, axis=-1, keepdims=True)                  # lane max (XLU)
    e_s = jnp.exp(s - m_s)                                    # full-tile exp #1
    lse_s = m_s + jnp.log(jnp.sum(e_s, axis=-1, keepdims=True))
    logp_s = s - lse_s                                        # log-softmax(student)
    cls = jax.lax.broadcasted_iota(jnp.int32, (tb, c), 1)
    picked = jnp.sum(jnp.where(cls == lbl, logp_s, 0.0),
                     axis=-1, keepdims=True)                  # (TB, 1) logp at label
    hard_acc[...] += -jnp.sum(picked * valid, axis=0, keepdims=True)

    # ---- soft loss: KL(softmax(teacher/T) || softmax(student/T)), summed ----
    st = s * inv_temp
    tt = t * inv_temp
    m_st = m_s * inv_temp                                     # max(s/T) = max(s)/T (T > 0)
    e_st = jnp.exp(st - m_st)                                 # full-tile exp #2
    logp_st = (st - m_st) - jnp.log(jnp.sum(e_st, axis=-1, keepdims=True))
    m_tt = jnp.max(tt, axis=-1, keepdims=True)
    e_tt = jnp.exp(tt - m_tt)                                 # full-tile exp #3 (reused below)
    sum_tt = jnp.sum(e_tt, axis=-1, keepdims=True)
    logp_tt = (tt - m_tt) - jnp.log(sum_tt)
    p_tt = e_tt * (1.0 / sum_tt)                              # reuse e_tt; (TB,1) divide only
    kl_row = jnp.sum(p_tt * (logp_tt - logp_st), axis=-1, keepdims=True)
    kl_acc[...] += jnp.sum(kl_row * valid, axis=0, keepdims=True)

    @pl.when(i == pl.num_programs(1) - 1)
    def _finalize():
        inv_n = 1.0 / float(total_rows)
        out_ref[...] = (alpha * inv_n) * hard_acc[...] + \
                       (beta * inv_n * temp_sq) * kl_acc[...]


def kl_loss(student_logits, teacher_logits, labels,
            temperature=2.0, alpha=1.0, beta=1.0,
            block_b=None, num_splits=None):
    """Pallas implementation of KL.forward (regular path, no filtering)."""
    b, c = student_logits.shape
    itemsize = jnp.dtype(student_logits.dtype).itemsize

    # Batch tile: ~6 MiB per input tile in native dtype (2 inputs x 2 pipeline
    # buffers stays well under the 48 MiB scoped-VMEM limit on v5e/v6e/v7x).
    if block_b is None:
        target_bytes = 6 * 1024 * 1024
        bb = max(8, (target_bytes // (c * itemsize)) // 8 * 8)
    else:
        bb = max(8, (block_b // 8) * 8)

    if bb >= b:
        block_b = _round_up(b, 8)
        nb_total = 1
    else:
        block_b = bb
        nb_total = _cdiv(b, block_b)

    if num_splits is None:
        num_splits = 2 if nb_total >= 2 else 1    # leading parallel axis -> both TCs on v7x
    num_splits = max(1, min(num_splits, nb_total))
    nb_inner = _cdiv(nb_total, num_splits)
    padded_b = block_b * nb_inner * num_splits

    lbl = labels.astype(jnp.int32).reshape(b, 1)
    pad = padded_b - b
    if pad:
        student_logits = jnp.pad(student_logits, ((0, pad), (0, 0)))
        teacher_logits = jnp.pad(teacher_logits, ((0, pad), (0, 0)))
        lbl = jnp.pad(lbl, ((0, pad), (0, 0)))

    kernel = functools.partial(
        _kl_kernel,
        inv_temp=1.0 / float(temperature), temp_sq=float(temperature) ** 2,
        alpha=float(alpha), beta=float(beta),
        total_rows=b, block_b=block_b, nb_inner=nb_inner)

    cost = pl.CostEstimate(
        flops=14 * padded_b * c,
        transcendentals=3 * padded_b * c,
        bytes_accessed=2 * padded_b * c * itemsize + padded_b * 4 + num_splits * 4)

    out = pl.pallas_call(
        kernel,
        out_shape=jax.ShapeDtypeStruct((num_splits, 1), jnp.float32),
        grid_spec=pltpu.PrefetchScalarGridSpec(
            num_scalar_prefetch=0,
            grid=(num_splits, nb_inner),
            in_specs=[
                pl.BlockSpec((block_b, c), lambda sp, i: (sp * nb_inner + i, 0)),
                pl.BlockSpec((block_b, c), lambda sp, i: (sp * nb_inner + i, 0)),
                pl.BlockSpec((block_b, 1), lambda sp, i: (sp * nb_inner + i, 0)),
            ],
            out_specs=pl.BlockSpec((1, 1), lambda sp, i: (sp, 0)),
            scratch_shapes=[
                pltpu.VMEM((1, 1), jnp.float32),   # hard-loss accumulator
                pltpu.VMEM((1, 1), jnp.float32),   # KL accumulator
            ],
        ),
        compiler_params=pltpu.CompilerParams(
            dimension_semantics=("parallel", "arbitrary"),
            vmem_limit_bytes=48 * 1024 * 1024),
        cost_estimate=cost,
    )(student_logits, teacher_logits, lbl)
    return jnp.sum(out)


def _kl_loss_ref(student, teacher, labels, temperature=2.0, alpha=1.0, beta=1.0):
    """Pure-JAX reference matching the PyTorch module."""
    logp_s = jax.nn.log_softmax(student, axis=1)
    hard = -jnp.mean(jnp.take_along_axis(logp_s, labels[:, None], axis=1))
    logp_st = jax.nn.log_softmax(student / temperature, axis=1)
    logp_tt = jax.nn.log_softmax(teacher / temperature, axis=1)
    p_tt = jnp.exp(logp_tt)
    soft = jnp.sum(p_tt * (logp_tt - logp_st)) / student.shape[0] * temperature ** 2
    return alpha * hard + beta * soft


if __name__ == "__main__":
    key = jax.random.PRNGKey(0)
    k1, k2, k3 = jax.random.split(key, 3)

    # Small case matching the module defaults (single tile, single split).
    B, C = 8, 32
    student = jax.random.normal(k1, (B, C), dtype=jnp.float32)
    teacher = jax.random.normal(k2, (B, C), dtype=jnp.float32)
    labels = jax.random.randint(k3, (B,), 0, C, dtype=jnp.int32)
    loss = jax.block_until_ready(kl_loss(student, teacher, labels))
    ref = _kl_loss_ref(student, teacher, labels)
    assert jnp.allclose(loss, ref, rtol=1e-5, atol=1e-5), (loss, ref)

    # Ragged batch + 2-way split path (exercises padding/masking + parallel axis).
    B2, C2 = 20, 160
    s2 = jax.random.normal(k1, (B2, C2), dtype=jnp.float32)
    t2 = jax.random.normal(k2, (B2, C2), dtype=jnp.float32)
    l2 = jax.random.randint(k3, (B2,), 0, C2, dtype=jnp.int32)
    loss2 = jax.block_until_ready(kl_loss(s2, t2, l2, block_b=8, num_splits=2))
    ref2 = _kl_loss_ref(s2, t2, l2)
    assert jnp.allclose(loss2, ref2, rtol=1e-5, atol=1e-5), (loss2, ref2)

    print("KERNEL_OK")
</pallas_src>

<mosaic_0001>
module attributes {stable_mosaic.version = 11 : i64} {
  func.func @_kl_kernel(%arg0: i32, %arg1: i32, %arg2: memref<8x32xf32, #tpu.memory_space<vmem>>, %arg3: memref<8x32xf32, #tpu.memory_space<vmem>>, %arg4: memref<8x1xi32, #tpu.memory_space<vmem>>, %arg5: memref<1x1xf32, #tpu.memory_space<vmem>>, %arg6: memref<1x1xf32, #tpu.memory_space<vmem>>, %arg7: memref<1x1xf32, #tpu.memory_space<vmem>>) attributes {dimension_semantics = [#tpu.dimension_semantics<parallel>, #tpu.dimension_semantics<arbitrary>], iteration_bounds = array<i64: 1, 1>, scalar_prefetch = 0 : i64, scratch_operands = 2 : i64, tpu.core_type = #tpu.core_type<tc>, window_params = [{transform_indices = @transform_0, window_bounds = array<i64: 8, 32>}, {transform_indices = @transform_1, window_bounds = array<i64: 8, 32>}, {transform_indices = @transform_2, window_bounds = array<i64: 8, 1>}, {transform_indices = @transform_3, window_bounds = array<i64: 1, 1>}]} {
    %c0_i32 = arith.constant 0 : i32
    %0 = arith.cmpi eq, %arg1, %c0_i32 : i32
    %1 = arith.extui %0 : i1 to i32
    %c0_i32_0 = arith.constant 0 : i32
    %2 = arith.cmpi ne, %1, %c0_i32_0 : i32
    scf.if %2 {
      %cst_31 = arith.constant 0.000000e+00 : f32
      %87 = vector.broadcast %cst_31 : f32 to vector<1x1xf32>
      %c0_32 = arith.constant 0 : index
      %c0_33 = arith.constant 0 : index
      %88 = vector.load %arg6[%c0_32, %c0_33] : memref<1x1xf32, #tpu.memory_space<vmem>>, vector<1x1xf32>
      tpu.vector_store %arg6[%c0_32, %c0_33], %87 {strides = array<i32>} : memref<1x1xf32, #tpu.memory_space<vmem>>, vector<1x1xf32>,
      %cst_34 = arith.constant 0.000000e+00 : f32
      %89 = vector.broadcast %cst_34 : f32 to vector<1x1xf32>
      %c0_35 = arith.constant 0 : index
      %c0_36 = arith.constant 0 : index
      %90 = vector.load %arg7[%c0_35, %c0_36] : memref<1x1xf32, #tpu.memory_space<vmem>>, vector<1x1xf32>
      tpu.vector_store %arg7[%c0_35, %c0_36], %89 {strides = array<i32>} : memref<1x1xf32, #tpu.memory_space<vmem>>, vector<1x1xf32>,
    } else {
    }
    %c0 = arith.constant 0 : index
    %c0_1 = arith.constant 0 : index
    %3 = vector.load %arg2[%c0, %c0_1] : memref<8x32xf32, #tpu.memory_space<vmem>>, vector<8x32xf32>
    %c0_2 = arith.constant 0 : index
    %c0_3 = arith.constant 0 : index
    %4 = vector.load %arg3[%c0_2, %c0_3] : memref<8x32xf32, #tpu.memory_space<vmem>>, vector<8x32xf32>
    %c0_4 = arith.constant 0 : index
    %c0_5 = arith.constant 0 : index
    %5 = vector.load %arg4[%c0_4, %c0_5] : memref<8x1xi32, #tpu.memory_space<vmem>>, vector<8x1xi32>
    %c1_i32 = arith.constant 1 : i32
    %6 = arith.muli %arg0, %c1_i32 : i32
    %7 = arith.addi %6, %arg1 : i32
    %c8_i32 = arith.constant 8 : i32
    %8 = arith.muli %7, %c8_i32 : i32
    %9 = tpu.iota {dimensions = array<i32: 0>} : vector<8x1xi32>
    %10 = vector.broadcast %8 : i32 to vector<8x1xi32>
    %11 = arith.addi %10, %9 : vector<8x1xi32>
    %c8_i32_6 = arith.constant 8 : i32
    %12 = vector.broadcast %c8_i32_6 : i32 to vector<8x1xi32>
    %13 = arith.cmpi slt, %11, %12 : vector<8x1xi32>
    %14 = arith.extui %13 : vector<8x1xi1> to vector<8x1xi32>
    %15 = arith.sitofp %14 : vector<8x1xi32> to vector<8x1xf32>
    %cst = arith.constant dense<0xFF800000> : vector<8xf32>
    %16 = vector.multi_reduction <maximumf>, %3, %cst [1] : vector<8x32xf32> to vector<8xf32>
    %17 = vector.shape_cast %16 : vector<8xf32> to vector<8x1xf32>
    %18 = vector.broadcast %17 : vector<8x1xf32> to vector<8x32xf32>
    %19 = arith.subf %3, %18 : vector<8x32xf32>
    %20 = math.exp %19 : vector<8x32xf32>
    %cst_7 = arith.constant dense<0.000000e+00> : vector<8xf32>
    %21 = vector.multi_reduction <add>, %20, %cst_7 [1] : vector<8x32xf32> to vector<8xf32>
    %22 = vector.shape_cast %21 : vector<8xf32> to vector<8x1xf32>
    %23 = math.log %22 : vector<8x1xf32>
    %24 = arith.addf %17, %23 : vector<8x1xf32>
    %25 = vector.broadcast %24 : vector<8x1xf32> to vector<8x32xf32>
    %26 = arith.subf %3, %25 : vector<8x32xf32>
    %27 = tpu.iota {dimensions = array<i32: 1>} : vector<8x32xi32>
    %28 = vector.broadcast %5 : vector<8x1xi32> to vector<8x32xi32>
    %29 = arith.cmpi eq, %27, %28 : vector<8x32xi32>
    %cst_8 = arith.constant 0.000000e+00 : f32
    %30 = vector.broadcast %cst_8 : f32 to vector<8x32xf32>
    %31 = arith.select %29, %26, %30 : vector<8x32xi1>, vector<8x32xf32>
    %cst_9 = arith.constant dense<0.000000e+00> : vector<8xf32>
    %32 = vector.multi_reduction <add>, %31, %cst_9 [1] : vector<8x32xf32> to vector<8xf32>
    %33 = vector.shape_cast %32 : vector<8xf32> to vector<8x1xf32>
    %c0_10 = arith.constant 0 : index
    %c0_11 = arith.constant 0 : index
    %34 = vector.load %arg6[%c0_10, %c0_11] : memref<1x1xf32, #tpu.memory_space<vmem>>, vector<1x1xf32>
    %35 = arith.mulf %33, %15 : vector<8x1xf32>
    %cst_12 = arith.constant dense<0.000000e+00> : vector<1xf32>
    %36 = vector.multi_reduction <add>, %35, %cst_12 [0] : vector<8x1xf32> to vector<1xf32>
    %37 = vector.shape_cast %36 : vector<1xf32> to vector<1x1xf32>
    %cst_13 = arith.constant 0.000000e+00 : f32
    %38 = vector.broadcast %cst_13 : f32 to vector<1x1xf32>
    %39 = arith.subf %38, %37 : vector<1x1xf32>
    %40 = arith.addf %34, %39 : vector<1x1xf32>
    %c0_14 = arith.constant 0 : index
    %c0_15 = arith.constant 0 : index
    %41 = vector.load %arg6[%c0_14, %c0_15] : memref<1x1xf32, #tpu.memory_space<vmem>>, vector<1x1xf32>
    tpu.vector_store %arg6[%c0_14, %c0_15], %40 {strides = array<i32>} : memref<1x1xf32, #tpu.memory_space<vmem>>, vector<1x1xf32>,
    %cst_16 = arith.constant 5.000000e-01 : f32
    %42 = vector.broadcast %cst_16 : f32 to vector<8x32xf32>
    %43 = arith.mulf %3, %42 : vector<8x32xf32>
    %cst_17 = arith.constant 5.000000e-01 : f32
    %44 = vector.broadcast %cst_17 : f32 to vector<8x32xf32>
    %45 = arith.mulf %4, %44 : vector<8x32xf32>
    %cst_18 = arith.constant 5.000000e-01 : f32
    %46 = vector.broadcast %cst_18 : f32 to vector<8x1xf32>
    %47 = arith.mulf %17, %46 : vector<8x1xf32>
    %48 = vector.broadcast %47 : vector<8x1xf32> to vector<8x32xf32>
    %49 = arith.subf %43, %48 : vector<8x32xf32>
    %50 = math.exp %49 : vector<8x32xf32>
    %51 = vector.broadcast %47 : vector<8x1xf32> to vector<8x32xf32>
    %52 = arith.subf %43, %51 : vector<8x32xf32>
    %cst_19 = arith.constant dense<0.000000e+00> : vector<8xf32>
    %53 = vector.multi_reduction <add>, %50, %cst_19 [1] : vector<8x32xf32> to vector<8xf32>
    %54 = vector.shape_cast %53 : vector<8xf32> to vector<8x1xf32>
    %55 = math.log %54 : vector<8x1xf32>
    %56 = vector.broadcast %55 : vector<8x1xf32> to vector<8x32xf32>
    %57 = arith.subf %52, %56 : vector<8x32xf32>
    %cst_20 = arith.constant dense<0xFF800000> : vector<8xf32>
    %58 = vector.multi_reduction <maximumf>, %45, %cst_20 [1] : vector<8x32xf32> to vector<8xf32>
    %59 = vector.shape_cast %58 : vector<8xf32> to vector<8x1xf32>
    %60 = vector.broadcast %59 : vector<8x1xf32> to vector<8x32xf32>
    %61 = arith.subf %45, %60 : vector<8x32xf32>
    %62 = math.exp %61 : vector<8x32xf32>
    %cst_21 = arith.constant dense<0.000000e+00> : vector<8xf32>
    %63 = vector.multi_reduction <add>, %62, %cst_21 [1] : vector<8x32xf32> to vector<8xf32>
    %64 = vector.shape_cast %63 : vector<8xf32> to vector<8x1xf32>
    %65 = vector.broadcast %59 : vector<8x1xf32> to vector<8x32xf32>
    %66 = arith.subf %45, %65 : vector<8x32xf32>
    %67 = math.log %64 : vector<8x1xf32>
    %68 = vector.broadcast %67 : vector<8x1xf32> to vector<8x32xf32>
    %69 = arith.subf %66, %68 : vector<8x32xf32>
    %cst_22 = arith.constant 1.000000e+00 : f32
    %70 = vector.broadcast %cst_22 : f32 to vector<8x1xf32>
    %71 = arith.divf %70, %64 : vector<8x1xf32>
    %72 = vector.broadcast %71 : vector<8x1xf32> to vector<8x32xf32>
    %73 = arith.mulf %62, %72 : vector<8x32xf32>
    %74 = arith.subf %69, %57 : vector<8x32xf32>
    %75 = arith.mulf %73, %74 : vector<8x32xf32>
    %cst_23 = arith.constant dense<0.000000e+00> : vector<8xf32>
    %76 = vector.multi_reduction <add>, %75, %cst_23 [1] : vector<8x32xf32> to vector<8xf32>
    %77 = vector.shape_cast %76 : vector<8xf32> to vector<8x1xf32>
    %c0_24 = arith.constant 0 : index
    %c0_25 = arith.constant 0 : index
    %78 = vector.load %arg7[%c0_24, %c0_25] : memref<1x1xf32, #tpu.memory_space<vmem>>, vector<1x1xf32>
    %79 = arith.mulf %77, %15 : vector<8x1xf32>
    %cst_26 = arith.constant dense<0.000000e+00> : vector<1xf32>
    %80 = vector.multi_reduction <add>, %79, %cst_26 [0] : vector<8x1xf32> to vector<1xf32>
    %81 = vector.shape_cast %80 : vector<1xf32> to vector<1x1xf32>
    %82 = arith.addf %78, %81 : vector<1x1xf32>
    %c0_27 = arith.constant 0 : index
    %c0_28 = arith.constant 0 : index
    %83 = vector.load %arg7[%c0_27, %c0_28] : memref<1x1xf32, #tpu.memory_space<vmem>>, vector<1x1xf32>
    tpu.vector_store %arg7[%c0_27, %c0_28], %82 {strides = array<i32>} : memref<1x1xf32, #tpu.memory_space<vmem>>, vector<1x1xf32>,
    %c0_i32_29 = arith.constant 0 : i32
    %84 = arith.cmpi eq, %arg1, %c0_i32_29 : i32
    %85 = arith.extui %84 : i1 to i32
    %c0_i32_30 = arith.constant 0 : i32
    %86 = arith.cmpi ne, %85, %c0_i32_30 : i32
    scf.if %86 {
      %c0_31 = arith.constant 0 : index
      %c0_32 = arith.constant 0 : index
      %87 = vector.load %arg6[%c0_31, %c0_32] : memref<1x1xf32, #tpu.memory_space<vmem>>, vector<1x1xf32>
      %cst_33 = arith.constant 1.250000e-01 : f32
      %88 = vector.broadcast %cst_33 : f32 to vector<1x1xf32>
      %89 = arith.mulf %88, %87 : vector<1x1xf32>
      %c0_34 = arith.constant 0 : index
      %c0_35 = arith.constant 0 : index
      %90 = vector.load %arg7[%c0_34, %c0_35] : memref<1x1xf32, #tpu.memory_space<vmem>>, vector<1x1xf32>
      %cst_36 = arith.constant 5.000000e-01 : f32
      %91 = vector.broadcast %cst_36 : f32 to vector<1x1xf32>
      %92 = arith.mulf %91, %90 : vector<1x1xf32>
      %93 = arith.addf %89, %92 : vector<1x1xf32>
      %c0_37 = arith.constant 0 : index
      %c0_38 = arith.constant 0 : index
      %94 = vector.load %arg5[%c0_37, %c0_38] : memref<1x1xf32, #tpu.memory_space<vmem>>, vector<1x1xf32>
      tpu.vector_store %arg5[%c0_37, %c0_38], %93 {strides = array<i32>} : memref<1x1xf32, #tpu.memory_space<vmem>>, vector<1x1xf32>,
    } else {
    }
    return
  }
  func.func @transform_0(%arg0: i32, %arg1: i32) -> (i32, i32) {
    %c1_i32 = arith.constant 1 : i32
    %0 = arith.muli %arg0, %c1_i32 : i32
    %1 = arith.addi %0, %arg1 : i32
    %c0_i32 = arith.constant 0 : i32
    %c0_i32_0 = arith.constant 0 : i32
    return %1, %c0_i32 : i32, i32
  }
  func.func @transform_1(%arg0: i32, %arg1: i32) -> (i32, i32) {
    %c1_i32 = arith.constant 1 : i32
    %0 = arith.muli %arg0, %c1_i32 : i32
    %1 = arith.addi %0, %arg1 : i32
    %c0_i32 = arith.constant 0 : i32
    %c0_i32_0 = arith.constant 0 : i32
    return %1, %c0_i32 : i32, i32
  }
  func.func @transform_2(%arg0: i32, %arg1: i32) -> (i32, i32) {
    %c1_i32 = arith.constant 1 : i32
    %0 = arith.muli %arg0, %c1_i32 : i32
    %1 = arith.addi %0, %arg1 : i32
    %c0_i32 = arith.constant 0 : i32
    %c0_i32_0 = arith.constant 0 : i32
    return %1, %c0_i32 : i32, i32
  }
  func.func @transform_3(%arg0: i32, %arg1: i32) -> (i32, i32) {
    %c0_i32 = arith.constant 0 : i32
    %c0_i32_0 = arith.constant 0 : i32
    return %arg0, %c0_i32 : i32, i32
  }
}

</mosaic_0001>

<bundles_post_ra>
// kernel: tpu_custom_call.1
= control target key start
LH: loop header
LB: loop body
LE: loop exit
PB: predicated region body
PF: predicated region fallthrough
CT: control target
= control target key end

     0   :  { %8 = vsyncpa [#allocation5], 0  ;;  %s332_s0 = inlined_call_operand.vmem [shape: f32[8,32], index: 0, kind: input, shape index: {}]   ;;  %s333_s1 = inlined_call_operand.hbm [shape: f32[8,32], index: 1, kind: input, shape index: {}]   ;;  %s334_s2 = inlined_call_operand.vmem [shape: s32[8,1], index: 2, kind: input, shape index: {}]   ;;  %s335_s3 = inlined_call_operand.hbm [shape: f32[1,1], index: 3, kind: output, shape index: {}]  }
   0x1   :  { %9 = vsyncpa [#allocation6], 0  ;;  %s266_s12 = smov [#allocation4]   ;;  %s218_s16 = scalar_lea.hbm %s333_s1, 128 }
   0x2   :  { %s27_s13 = sshll.u32 %s266_s12, 4  ;;  %p219_p0 = scmp.ne.s32.totalorder %s333_s1, %s218_s16  ;;  %s28_s13 = int_to_ptr.vmem [resolvable:$true] %s27_s13 }
   0x3   :  { %p222_p1 = scmp.lt.u32.totalorder %s218_s16, %s333_s1 }
   0x5   :  { %p224_p2 = pnand %p222_p1, %p219_p0 }
   0x7   :  { %227 = shalt.err (!%p224_p2)
}
   0x8   :  { %s228_s21 = scalar_lea.vmem %s28_s13, 128  ;;  %p233_p4 = scmp.lt.s32.totalorder %s28_s13, %s28_s13 }
   0x9   :  { %p229_p3 = scmp.ne.s32.totalorder %s28_s13, %s228_s21  ;;  %p234_p5 = scmp.lt.s32.totalorder %s228_s21, %s228_s21 }
   0xb   :  { %p235_p6 = por %p234_p5, %p233_p4 }
   0xd   :  { %p236_p7 = pnand %p235_p6, %p229_p3 }
   0xf   :  { %239 = shalt.err (!%p236_p7)
}
  0x10   :  { %30 = dma.hbm_to_vmem [thread:$0]  %s333_s1, 128, %s28_s13, [#allocation5]  }
  0x11   :  { %262 = dma.done.wait [#allocation5], 128  }
  0x12   :  { %263 = vsyncadd [#allocation5], 4294967168  ;;  %vm84_vm0 = vcmask 261120   ;;  %v72_v0 = vld [vmem:[%s332_s0] sm:$0xff]  ;;  %v267_v5 = vmov 0   ;;  %v98_v26 = vlaneseq  ;;  %vm69_vm2 = vcmask 0  }
  0x13   :  { %v73_v1 = vld [vmem:[#allocation4] sm:$0xff]  ;;  %v85_v2 = vsel %vm84_vm0, %v72_v0, -inf  ;;  %202 = vset.pattern.permute.xlu1 %v267_v5  ;;  %203 = vset.pattern.permute.xlu0 %v267_v5  ;;  %v120_v6 = vmul.f32 0.5, %v72_v0  ;;  %v268_v46 = vmov 0.0  }
  0x14   :  { %v121_v3 = vmul.f32 0.5, %v73_v1  ;;  %86 = vmax.xlane.f32.xlu0 %v85_v2  ;;  %v74_v22 = vld [vmem:[%s334_s2] sm:$0xff]  ;;  %v99_v28 = vand.u32 127, %v98_v26  ;;  %70 = vst.msk [vmem:[#allocation2] sm:$0x1] %vm69_vm2, %v268_v46  ;;  %s269_s2 = smov [#allocation7]  }
  0x15   :  { %71 = vst.msk [vmem:[#allocation3] sm:$0x1] %vm69_vm2, %v268_v46  ;;  %s177_s26 = sshll.u32 %s269_s2, 4  ;;  %s178_s26 = int_to_ptr.vmem [resolvable:$true] %s177_s26 }
  0x16   :  { %v132_v4 = vsel %vm84_vm0, %v121_v3, -inf  ;;  %s240_s27 = scalar_lea.vmem %s178_s26, 16  ;;  %s244_s28 = scalar_lea.vmem %s178_s26, 32 }
  0x17   :  { %p241_p8 = scmp.ne.s32.totalorder %s178_s26, %s240_s27  ;;  %p245_p9 = scmp.lt.s32.totalorder %s178_s26, %s178_s26 }
  0x18   :  { %133 = vmax.xlane.f32.xlu0 %v132_v4  ;;  %p246_p10 = scmp.lt.s32.totalorder %s244_s28, %s240_s27 }
  0x1a   :  { %p247_p11 = por %p246_p10, %p245_p9 }
  0x1b   :  { %v108_v58 = vld [vmem:[#allocation2] sm:$0x1] }
  0x1c   :  { %v152_v63 = vld [vmem:[#allocation3] sm:$0x1]  ;;  %p248_p12 = pnand %p247_p11, %p241_p8 }
  0xa1   :  { %v87_v7 = vpop.xlane.xlu0 %86 }
  0xa2   :  { %v88_v8 = vsub.f32 %v72_v0, %v87_v7  ;;  %v122_v9 = vmul.f32 0.5, %v87_v7 }
  0xa4   :  { %v89_v10 = vmul.f32 1.442695, %v88_v8  ;;  %v123_v11 = vsub.f32 %v120_v6, %v122_v9 }
  0xa5   :  { %v134_v12 = vpop.xlane.xlu0 %133 }
  0xa6   :  { %204 = vpow2.f32 %v89_v10  ;;  %v124_v13 = vmul.f32 1.442695, %v123_v11  ;;  %v135_v14 = vsub.f32 %v121_v3, %v134_v12 }
  0xa8   :  { %206 = vpow2.f32 %v124_v13  ;;  %v136_v15 = vmul.f32 1.442695, %v135_v14 }
  0xaa   :  { %208 = vpow2.f32 %v136_v15 }
  0xb0   :  { %v205_v16 = vpop.eup %204 }
  0xb1   :  { %v91_v17 = vsel %vm84_vm0, %v205_v16, 0.0 }
  0xb2   :  { %v207_v18 = vpop.eup %206  ;;  %92 = vadd.xlane.f32.xlu1 %v91_v17 }
  0xb3   :  { %v126_v20 = vsel %vm84_vm0, %v207_v18, 0.0 }
  0xb4   :  { %v209_v19 = vpop.eup %208 }
  0xb5   :  { %v138_v21 = vsel %vm84_vm0, %v209_v19, 0.0 }
  0xb6   :  { %127 = vadd.xlane.f32.xlu1 %v126_v20  ;;  %139 = vadd.xlane.f32.xlu0 %v138_v21 }
  0xc7   :  { %101 = vperm.xlu1 %202, %v74_v22  }
 0x13f   :  { %v93_v23 = vpop.xlane.xlu1 %92 }
 0x140   :  { %210 = vlog2.f32 %v93_v23 }
 0x143   :  { %v128_v24 = vpop.xlane.xlu1 %127  ;;  %v140_v25 = vpop.xlane.xlu0 %139 }
 0x144   :  { %212 = vlog2.f32 %v128_v24 }
 0x145   :  { %214 = vlog2.f32 %v140_v25 }
 0x146   :  { %216 = vrcp.f32 %v140_v25 }
 0x147   :  { %v102_v30 = vpop.permute.xlu1 %101 }
 0x148   :  { %vm103_vm1 = vcmp.eq.s32.totalorder %v99_v28, %v102_v30 }
 0x14a   :  { %v211_v27 = vpop.eup %210 }
 0x14b   :  { %v95_v29 = vmul.f32 0.6931472, %v211_v27 }
 0x14d   :  { %v96_v31 = vadd.f32 %v95_v29, %v87_v7 }
 0x14e   :  { %v213_v32 = vpop.eup %212 }
 0x14f   :  { %v215_v33 = vpop.eup %214  ;;  %v130_v34 = vmul.f32 0.6931472, %v213_v32  ;;  %v97_v35 = vsub.f32 %v72_v0, %v96_v31 }
 0x150   :  { %v142_v36 = vmul.f32 0.6931472, %v215_v33  ;;  %v217_v37 = vpop.eup %216 }
 0x151   :  { %v131_v38 = vsub.f32 %v123_v11, %v130_v34  ;;  %v104_v39 = vsel %vm103_vm1, %v97_v35, 0.0  ;;  %v146_v42 = vmul.f32 %v217_v37, %v209_v19 }
 0x152   :  { %v105_v40 = vsel %vm84_vm0, %v104_v39, 0.0  ;;  %v143_v41 = vsub.f32 %v135_v14, %v142_v36 }
 0x153   :  { %106 = vadd.xlane.f32.xlu0 %v105_v40 }
 0x154   :  { %v147_v43 = vsub.f32 %v143_v41, %v131_v38 }
 0x156   :  { %v148_v44 = vmul.f32 %v147_v43, %v146_v42 }
 0x158   :  { %v149_v45 = vsel %vm84_vm0, %v148_v44, 0.0 }
 0x159   :  { %150 = vadd.xlane.f32.xlu0 %v149_v45 }
 0x1e0   :  { %v107_v47 = vpop.xlane.xlu0 %106 }
 0x1e1   :  { %v110_v48 = vrot.slane %v107_v47, 4 }
 0x1e3   :  { %v111_v49 = vadd.f32 %v110_v48, %v107_v47 }
 0x1e5   :  { %v112_v50 = vrot.slane %v111_v49, 2 }
 0x1e6   :  { %v151_v51 = vpop.xlane.xlu0 %150 }
 0x1e7   :  { %v113_v52 = vadd.f32 %v112_v50, %v111_v49  ;;  %v154_v53 = vrot.slane %v151_v51, 4 }
 0x1e9   :  { %v114_v54 = vrot.slane %v113_v52, 1  ;;  %v155_v55 = vadd.f32 %v154_v53, %v151_v51 }
 0x1eb   :  { %v115_v56 = vadd.f32 %v114_v54, %v113_v52  ;;  %v156_v57 = vrot.slane %v155_v55, 2 }
 0x1ed   :  { %v116_v59 = vsub.f32 0.0, %v115_v56  ;;  %v157_v60 = vadd.f32 %v156_v57, %v155_v55 }
 0x1ef   :  { %v158_v61 = vrot.slane %v157_v60, 1  ;;  %v117_v62 = vadd.f32 %v116_v59, %v108_v58 }
 0x1f1   :  { %v159_v0 = vadd.f32 %v158_v61, %v157_v60  ;;  %119 = vst.msk [vmem:[#allocation2] sm:$0x1] %vm69_vm2, %v117_v62 }
 0x1f3   :  { %v160_v1 = vadd.f32 %v159_v0, %v152_v63 }
 0x1f5   :  { %161 = vst.msk [vmem:[#allocation3] sm:$0x1] %vm69_vm2, %v160_v1 }
 0x1f8   :  { %v165_v2 = vld [vmem:[#allocation2] sm:$0x1] }
 0x1f9   :  { %v166_v4 = vmul.f32 0.125, %v165_v2 }
 0x1fc   :  { %v167_v3 = vld [vmem:[#allocation3] sm:$0x1] }
 0x1fd   :  { %v168_v5 = vmul.f32 0.5, %v167_v3 }
 0x1ff   :  { %v169_v6 = vadd.f32 %v168_v5, %v166_v4 }
 0x201   :  { %170 = vst.msk [vmem:[#allocation7] sm:$0x1] %vm69_vm2, %v169_v6 }
 0x202   :  { %251 = shalt.err (!%p248_p12)
}
 0x203   :  { %s252_s4 = scalar_lea.hbm %s335_s3, 16 }
 0x204   :  { %p253_p13 = scmp.ne.s32.totalorder %s335_s3, %s252_s4  ;;  %p256_p0 = scmp.lt.u32.totalorder %s252_s4, %s335_s3 }
 0x206   :  { %p258_p1 = pnand %p256_p0, %p253_p13 }
 0x208   :  { %261 = shalt.err (!%p258_p1)
}
 0x209   :  { %180 = dma.vmem_to_hbm [thread:$0]  %s178_s26, 16, %s335_s3, [#allocation6]  }
 0x20a   :  { %264 = dma.done.wait [#allocation6], 16  }
 0x20b   :  { %265 = vsyncadd [#allocation6], 4294967280 }
 0x20c   :  { %184 = vsyncpa [#allocation5], 1 }
 0x20d   :  { %185 = vsyncpa [#allocation6], 1 }

</bundles_post_ra>
